<compile_context>
chip_gen: v7x
topology: tpu7x:2x2x1
jax: 0.10.0
libtpu: 0.0.40
codegen_flags: <defaults>
</compile_context>

<pallas_src>
import jax
import jax.numpy as jnp
from jax.experimental import pallas as pl
from jax.experimental.pallas import tpu as pltpu


_LANE = 512             # lane-dense last dim (multiple of 128 -> unmasked vst)
_MAX_BLOCK_ROWS = 1024  # 1024 x 512 x 4B = 2 MiB per f32 block (v7x-safe)


def _round_up(x, m):
    return (x + m - 1) // m * m


def _eval_kernel(scale_ref, x_ref, y_ref, o_ref):
    # o = x + scale * y        (dropout is identity in eval mode)
    s = scale_ref[0].astype(y_ref.dtype)
    o_ref[...] = x_ref[...] + s * y_ref[...]


def _train_kernel(scale_ref, x_ref, y_ref, keep_ref, o_ref):
    # o = x + where(keep, scale * y, 0)   with scale = a / (1 - p) pre-folded
    s = scale_ref[0].astype(y_ref.dtype)
    y = y_ref[...]
    kept = keep_ref[...] != 0
    o_ref[...] = x_ref[...] + jnp.where(kept, s * y, jnp.zeros_like(y))


def sublayer_connection(x, out_x, a, *,
                        enable_res_parameter=True,
                        dropout_p=0.1,
                        training=False,
                        rng_key=None):
    """o = x + dropout(a * out_x) (or x + dropout(out_x)).  x, out_x: (B, L, D)."""
    assert x.shape == out_x.shape
    out_x = out_x.astype(x.dtype)
    orig_shape = x.shape
    n = x.size

    # ---- fold `a` and the inverse keep-probability into one scalar (SMEM) ----
    use_dropout = bool(training) and float(dropout_p) > 0.0
    scale = jnp.asarray(a, jnp.float32) if enable_res_parameter else jnp.float32(1.0)
    if use_dropout:
        scale = scale * jnp.float32(1.0 / (1.0 - float(dropout_p)))
    scale = jnp.reshape(scale, (1,)).astype(jnp.float32)

    # ---- flatten to a lane-dense 2D slab and pick large row tiles ----
    rows = max(1, -(-n // _LANE))          # ceil-div
    rows_padded = _round_up(rows, 8)
    if rows_padded <= _MAX_BLOCK_ROWS:
        block_rows = rows_padded           # single block == full (padded) array
    else:
        block_rows = _MAX_BLOCK_ROWS
        rows_padded = _round_up(rows, _MAX_BLOCK_ROWS)
    padded_n = rows_padded * _LANE
    grid = (rows_padded // block_rows,)

    def to_slab(t):
        t = t.reshape(-1)
        if padded_n != n:
            t = jnp.pad(t, (0, padded_n - n))
        return t.reshape(rows_padded, _LANE)

    x2 = to_slab(x)
    y2 = to_slab(out_x)

    blk = pl.BlockSpec((block_rows, _LANE), lambda i: (i, 0))
    smem = pl.BlockSpec(memory_space=pltpu.MemorySpace.SMEM)
    cparams = pltpu.CompilerParams(dimension_semantics=("parallel",))
    out_shape = jax.ShapeDtypeStruct((rows_padded, _LANE), x.dtype)

    if use_dropout:
        if rng_key is None:
            rng_key = jax.random.PRNGKey(0)
        keep = jax.random.bernoulli(
            rng_key, 1.0 - float(dropout_p), (rows_padded, _LANE)
        ).astype(jnp.uint8)
        o2 = pl.pallas_call(
            _train_kernel,
            out_shape=out_shape,
            grid=grid,
            in_specs=[smem, blk, blk, blk],
            out_specs=blk,
            compiler_params=cparams,
        )(scale, x2, y2, keep)
    else:
        o2 = pl.pallas_call(
            _eval_kernel,
            out_shape=out_shape,
            grid=grid,
            in_specs=[smem, blk, blk],
            out_specs=blk,
            compiler_params=cparams,
        )(scale, x2, y2)

    return o2.reshape(-1)[:n].reshape(orig_shape)


if __name__ == "__main__":
    key = jax.random.PRNGKey(0)
    kx, ko, kd = jax.random.split(key, 3)

    B, L, D = 2, 8, 32
    x = jax.random.normal(kx, (B, L, D), dtype=jnp.float32)
    out_x = jax.random.normal(ko, (B, L, D), dtype=jnp.float32)

    # Deterministic parameter init, as in the module's __init__.
    a = jnp.float32(0.5)

    # --- eval mode (dropout = identity), res parameter enabled ---
    y_eval = sublayer_connection(x, out_x, a, enable_res_parameter=True,
                                 dropout_p=0.1, training=False)
    y_eval = jax.block_until_ready(y_eval)
    assert y_eval.shape == x.shape
    assert jnp.allclose(y_eval, x + a * out_x, atol=1e-6, rtol=1e-6), "eval mismatch"

    # --- eval mode, res parameter disabled ---
    y_nores = sublayer_connection(x, out_x, a, enable_res_parameter=False,
                                  dropout_p=0.1, training=False)
    y_nores = jax.block_until_ready(y_nores)
    assert jnp.allclose(y_nores, x + out_x, atol=1e-6, rtol=1e-6), "no-param mismatch"

    # --- training mode: dropout mask applied inside the kernel ---
    y_train = sublayer_connection(x, out_x, a, enable_res_parameter=True,
                                  dropout_p=0.1, training=True, rng_key=kd)
    y_train = jax.block_until_ready(y_train)
    # Every element is either x (dropped) or x + (a / 0.9) * out_x (kept).
    kept_val = x + (a / 0.9) * out_x
    is_drop = jnp.isclose(y_train, x, atol=1e-5)
    is_keep = jnp.isclose(y_train, kept_val, atol=1e-5)
    assert bool(jnp.all(is_drop | is_keep)), "training-mode dropout values invalid"

    print("KERNEL_OK")
</pallas_src>

<mosaic_0001>
module attributes {stable_mosaic.version = 11 : i64} {
  func.func @_eval_kernel(%arg0: i32, %arg1: memref<1xf32, #tpu.memory_space<smem>>, %arg2: memref<8x512xf32, #tpu.memory_space<vmem>>, %arg3: memref<8x512xf32, #tpu.memory_space<vmem>>, %arg4: memref<8x512xf32, #tpu.memory_space<vmem>>) attributes {dimension_semantics = [#tpu.dimension_semantics<parallel>], iteration_bounds = array<i64: 1>, scalar_prefetch = 0 : i64, scratch_operands = 0 : i64, tpu.core_type = #tpu.core_type<tc>, window_params = [{transform_indices = @transform_0, window_bounds = array<i64: 1>}, {transform_indices = @transform_1, window_bounds = array<i64: 8, 512>}, {transform_indices = @transform_2, window_bounds = array<i64: 8, 512>}, {transform_indices = @transform_3, window_bounds = array<i64: 8, 512>}]} {
    %c0 = arith.constant 0 : index
    %0 = memref.load %arg1[%c0] : memref<1xf32, #tpu.memory_space<smem>>
    %c0_0 = arith.constant 0 : index
    %c0_1 = arith.constant 0 : index
    %1 = vector.load %arg2[%c0_0, %c0_1] : memref<8x512xf32, #tpu.memory_space<vmem>>, vector<8x512xf32>
    %c0_2 = arith.constant 0 : index
    %c0_3 = arith.constant 0 : index
    %2 = vector.load %arg3[%c0_2, %c0_3] : memref<8x512xf32, #tpu.memory_space<vmem>>, vector<8x512xf32>
    %3 = vector.broadcast %0 : f32 to vector<8x512xf32>
    %4 = arith.mulf %3, %2 : vector<8x512xf32>
    %5 = arith.addf %1, %4 : vector<8x512xf32>
    %c0_4 = arith.constant 0 : index
    %c0_5 = arith.constant 0 : index
    %6 = vector.load %arg4[%c0_4, %c0_5] : memref<8x512xf32, #tpu.memory_space<vmem>>, vector<8x512xf32>
    tpu.vector_store %arg4[%c0_4, %c0_5], %5 {strides = array<i32>} : memref<8x512xf32, #tpu.memory_space<vmem>>, vector<8x512xf32>,
    return
  }
  func.func @transform_0(%arg0: i32) -> i32 {
    %c0_i32 = arith.constant 0 : i32
    %c0_i32_0 = arith.constant 0 : i32
    return %c0_i32 : i32
  }
  func.func @transform_1(%arg0: i32) -> (i32, i32) {
    %c0_i32 = arith.constant 0 : i32
    %c0_i32_0 = arith.constant 0 : i32
    return %arg0, %c0_i32 : i32, i32
  }
  func.func @transform_2(%arg0: i32) -> (i32, i32) {
    %c0_i32 = arith.constant 0 : i32
    %c0_i32_0 = arith.constant 0 : i32
    return %arg0, %c0_i32 : i32, i32
  }
  func.func @transform_3(%arg0: i32) -> (i32, i32) {
    %c0_i32 = arith.constant 0 : i32
    %c0_i32_0 = arith.constant 0 : i32
    return %arg0, %c0_i32 : i32, i32
  }
}

</mosaic_0001>

<bundles_post_ra>
// kernel: tpu_custom_call.1
= control target key start
LH: loop header
LB: loop body
LE: loop exit
PB: predicated region body
PF: predicated region fallthrough
CT: control target
= control target key end

     0   :  { %9 = vsyncpa [#allocation4], 0  ;;  %s215_s0 = inlined_call_operand.<no memory space> [shape: f32[1], index: 0, kind: input, shape index: {}]   ;;  %s216_s1 = inlined_call_operand.hbm [shape: f32[8,512], index: 1, kind: input, shape index: {}]   ;;  %s217_s2 = inlined_call_operand.hbm [shape: f32[8,512], index: 2, kind: input, shape index: {}]   ;;  %s218_s3 = inlined_call_operand.hbm [shape: f32[8,512], index: 3, kind: output, shape index: {}]  }
   0x1   :  { %10 = vsyncpa [#allocation7], 0 }
   0x2   :  { %11 = vsyncpa [#allocation5], 0  ;;  %s153_s12 = smov [#allocation3]   ;;  %s154_s14 = smov [#allocation6]  }
   0x3   :  { %s20_s13 = sshll.u32 %s153_s12, 4  ;;  %s30_s15 = sshll.u32 %s154_s14, 4  ;;  %s21_s13 = int_to_ptr.vmem [resolvable:$true] %s20_s13  ;;  %s31_s15 = int_to_ptr.vmem [resolvable:$true] %s30_s15 }
   0x4   :  { %s81_s18 = scalar_lea.hbm %s216_s1, 512 }
   0x5   :  { %p82_p0 = scmp.ne.s32.totalorder %s216_s1, %s81_s18  ;;  %p85_p1 = scmp.lt.u32.totalorder %s81_s18, %s216_s1 }
   0x7   :  { %p87_p2 = pnand %p85_p1, %p82_p0 }
   0x9   :  { %90 = shalt.err (!%p87_p2)
}
   0xa   :  { %s91_s23 = scalar_lea.vmem %s21_s13, 512  ;;  %p96_p4 = scmp.lt.s32.totalorder %s21_s13, %s21_s13 }
   0xb   :  { %p92_p3 = scmp.ne.s32.totalorder %s21_s13, %s91_s23  ;;  %p97_p5 = scmp.lt.s32.totalorder %s91_s23, %s91_s23 }
   0xd   :  { %p98_p6 = por %p97_p5, %p96_p4 }
   0xf   :  { %p99_p7 = pnand %p98_p6, %p92_p3 }
  0x11   :  { %102 = shalt.err (!%p99_p7)
}
  0x12   :  { %23 = dma.hbm_to_vmem [thread:$0]  %s216_s1, 512, %s21_s13, [#allocation4]  }
  0x13   :  { %s103_s28 = scalar_lea.hbm %s217_s2, 512 }
  0x14   :  { %p104_p8 = scmp.ne.s32.totalorder %s217_s2, %s103_s28  ;;  %p107_p9 = scmp.lt.u32.totalorder %s103_s28, %s217_s2 }
  0x16   :  { %p109_p10 = pnand %p107_p9, %p104_p8 }
  0x18   :  { %112 = shalt.err (!%p109_p10)
}
  0x19   :  { %s113_s6 = scalar_lea.vmem %s31_s15, 512  ;;  %p118_p12 = scmp.lt.s32.totalorder %s31_s15, %s31_s15 }
  0x1a   :  { %p114_p11 = scmp.ne.s32.totalorder %s31_s15, %s113_s6  ;;  %p119_p13 = scmp.lt.s32.totalorder %s113_s6, %s113_s6 }
  0x1c   :  { %p120_p0 = por %p119_p13, %p118_p12 }
  0x1e   :  { %p121_p1 = pnand %p120_p0, %p114_p11 }
  0x20   :  { %124 = shalt.err (!%p121_p1)
}
  0x21   :  { %33 = dma.hbm_to_vmem [thread:$0]  %s217_s2, 512, %s31_s15, [#allocation7]  }
  0x22   :  { %147 = dma.done.wait [#allocation4], 512  }
  0x23   :  { %148 = vsyncadd [#allocation4], 4294966784 }
  0x24   :  { %149 = dma.done.wait [#allocation7], 512  }
  0x25   :  { %150 = vsyncadd [#allocation7], 4294966784  ;;  %v49_v0 = vstv %s215_s0  ;;  %v41_v1 = vld [vmem:[#allocation3] sm:$0xff]  ;;  %v42_v3 = vld [vmem:[#allocation3 + $0x8] sm:$0xff]  ;;  %s155_s2 = smov [#allocation8]  }
  0x26   :  { %v45_v2 = vld [vmem:[#allocation6] sm:$0xff]  ;;  %v46_v5 = vld [vmem:[#allocation6 + $0x8] sm:$0xff]  ;;  %v43_v6 = vld [vmem:[#allocation3 + $0x10] sm:$0xff]  ;;  %s68_s10 = sshll.u32 %s155_s2, 4  ;;  %s69_s10 = int_to_ptr.vmem [resolvable:$true] %s68_s10 }
  0x27   :  { %v50_v4 = vmul.f32 %v49_v0, %v45_v2  ;;  %v47_v7 = vld [vmem:[#allocation6 + $0x10] sm:$0xff]  ;;  %v51_v8 = vmul.f32 %v49_v0, %v46_v5  ;;  %v44_v10 = vld [vmem:[#allocation3 + $0x18] sm:$0xff]  ;;  %s125_s0 = scalar_lea.vmem %s69_s10, 512  ;;  %p130_p3 = scmp.lt.s32.totalorder %s69_s10, %s69_s10 }
  0x28   :  { %v52_v9 = vmul.f32 %v49_v0, %v47_v7  ;;  %v48_v11 = vld [vmem:[#allocation6 + $0x18] sm:$0xff]  ;;  %p126_p2 = scmp.ne.s32.totalorder %s69_s10, %s125_s0  ;;  %p131_p4 = scmp.lt.s32.totalorder %s125_s0, %s125_s0 }
  0x29   :  { %v54_v12 = vadd.f32 %v50_v4, %v41_v1  ;;  %v53_v13 = vmul.f32 %v49_v0, %v48_v11  ;;  %v55_v14 = vadd.f32 %v51_v8, %v42_v3 }
  0x2a   :  { %v56_v15 = vadd.f32 %v52_v9, %v43_v6  ;;  %p132_p5 = por %p131_p4, %p130_p3 }
  0x2b   :  { %58 = vst [vmem:[#allocation8] sm:$0xff] %v54_v12  ;;  %v57_v16 = vadd.f32 %v53_v13, %v44_v10  ;;  %59 = vst [vmem:[#allocation8 + $0x8] sm:$0xff] %v55_v14 }
  0x2c   :  { %60 = vst [vmem:[#allocation8 + $0x10] sm:$0xff] %v56_v15  ;;  %p133_p6 = pnand %p132_p5, %p126_p2 }
  0x2d   :  { %61 = vst [vmem:[#allocation8 + $0x18] sm:$0xff] %v57_v16 }
  0x2e   :  { %136 = shalt.err (!%p133_p6)
}
  0x2f   :  { %s137_s13 = scalar_lea.hbm %s218_s3, 512 }
  0x30   :  { %p138_p7 = scmp.ne.s32.totalorder %s218_s3, %s137_s13  ;;  %p141_p8 = scmp.lt.u32.totalorder %s137_s13, %s218_s3 }
  0x32   :  { %p143_p9 = pnand %p141_p8, %p138_p7 }
  0x34   :  { %146 = shalt.err (!%p143_p9)
}
  0x35   :  { %71 = dma.vmem_to_hbm [thread:$0]  %s69_s10, 512, %s218_s3, [#allocation5]  }
  0x36   :  { %151 = dma.done.wait [#allocation5], 512  }
  0x37   :  { %152 = vsyncadd [#allocation5], 4294966784 }
  0x38   :  { %75 = vsyncpa [#allocation4], 1 }
  0x39   :  { %76 = vsyncpa [#allocation7], 1 }
  0x3a   :  { %77 = vsyncpa [#allocation5], 1 }

</bundles_post_ra>
